<compile_context>
chip_gen: v6e
topology: v6e:2x2x1
jax: 0.10.0
libtpu: 0.0.40
codegen_flags: <defaults>
</compile_context>

<pallas_src>
import jax
import jax.numpy as jnp
from jax.experimental import pallas as pl
from jax.experimental.pallas import tpu as pltpu


def _dvn_kernel(xt_ref, w1t_ref, b1t_ref, w2t_ref, b2_ref, o_ref):
    """One batch tile, batch on lanes.

    xt_ref : (3, T)   input features^T           (VMEM, pipelined)
    w1t_ref: (32, 3)  first-layer weight^T       (VMEM, resident)
    b1t_ref: (32, 1)  first-layer bias           (VMEM, resident)
    w2t_ref: (32, 1)  second-layer weight^T      (VMEM, resident)
    b2_ref : (1,)     second-layer bias scalar   (SMEM)
    o_ref  : (1, T)   output^T                   (VMEM, pipelined, lane-dense)
    """
    xt = xt_ref[...]          # (3, T)
    w1t = w1t_ref[...]        # (32, 3)
    b1t = b1t_ref[...]        # (32, 1)
    w2t = w2t_ref[...]        # (32, 1)

    # Hidden layer: K=3 would waste the MXU, so do 3 lane-dense VPU FMAs.
    # (32,1) lane-broadcast x (1,T) sublane-broadcast -> (32, T)
    h = b1t + w1t[:, 0:1] * xt[0:1, :]
    for k in range(1, xt_ref.shape[0]):
        h = h + w1t[:, k : k + 1] * xt[k : k + 1, :]
    h = jnp.maximum(h, 0.0)   # ReLU, (32, T)

    # Output layer: weighted cross-sublane reduction instead of a (T,32)@(32,1)
    # MXU pass (only 1 useful result column). Keeps the extended slot free.
    y = jnp.sum(h * w2t, axis=0, keepdims=True) + b2_ref[0]   # (1, T)
    o_ref[...] = y.astype(o_ref.dtype)


def dvn_forward(x, w1, b1, w2, b2, *, tile_n=1024):
    """x: (N, 3) float32 -> (N, 1) float32.

    w1: (3, 32), b1: (32,), w2: (32,) or (1,32)/(32,1), b2: scalar.
    """
    n, in_f = x.shape
    hidden = w1.shape[1]

    n_pad = pl.cdiv(n, tile_n) * tile_n
    grid = (n_pad // tile_n,)

    # Flip to batch-on-lanes layout and pad the batch tail with zeros.
    xt = jnp.transpose(x)                                   # (3, N)
    if n_pad != n:
        xt = jnp.pad(xt, ((0, 0), (0, n_pad - n)))          # (3, N_pad)
    w1t = jnp.transpose(w1)                                 # (32, 3)
    b1t = jnp.reshape(b1, (hidden, 1)).astype(jnp.float32)  # (32, 1)
    w2t = jnp.reshape(w2, (hidden, 1)).astype(jnp.float32)  # (32, 1)
    b2s = jnp.reshape(b2, (1,)).astype(jnp.float32)         # (1,) scalar in SMEM

    flops = 2 * n_pad * (in_f * hidden + hidden)
    bytes_accessed = 4 * (xt.size + n_pad + w1t.size + b1t.size + w2t.size + 1)

    out = pl.pallas_call(
        _dvn_kernel,
        out_shape=jax.ShapeDtypeStruct((1, n_pad), jnp.float32),
        grid_spec=pltpu.PrefetchScalarGridSpec(
            num_scalar_prefetch=0,
            grid=grid,
            in_specs=[
                # Streamed input tile: (3, TILE_N), lane-dense.
                pl.BlockSpec((in_f, tile_n), lambda i: (0, i)),
                # Parameters: constant block index -> resident in VMEM.
                pl.BlockSpec((hidden, in_f), lambda i: (0, 0)),
                pl.BlockSpec((hidden, 1), lambda i: (0, 0)),
                pl.BlockSpec((hidden, 1), lambda i: (0, 0)),
                # Scalar output bias in SMEM (no padded VMEM tile / DMA per scalar).
                pl.BlockSpec(memory_space=pltpu.MemorySpace.SMEM),
            ],
            # Lane-dense output tile (1, TILE_N).
            out_specs=pl.BlockSpec((1, tile_n), lambda i: (0, i)),
        ),
        compiler_params=pltpu.CompilerParams(
            dimension_semantics=("parallel",),   # lets v7x use both TensorCores
        ),
        cost_estimate=pl.CostEstimate(
            flops=flops, transcendentals=0, bytes_accessed=bytes_accessed
        ),
    )(xt, w1t, b1t, w2t, b2s)

    return jnp.reshape(out[0, :n], (n, 1))


def init_params(key):
    """Deterministic init mimicking nn.Linear defaults (uniform +/- 1/sqrt(fan_in))."""
    k1, k2, k3, k4 = jax.random.split(key, 4)
    bound1 = 1.0 / jnp.sqrt(3.0)
    bound2 = 1.0 / jnp.sqrt(32.0)
    w1 = jax.random.uniform(k1, (3, 32), jnp.float32, -bound1, bound1)
    b1 = jax.random.uniform(k2, (32,), jnp.float32, -bound1, bound1)
    w2 = jax.random.uniform(k3, (32,), jnp.float32, -bound2, bound2)
    b2 = jax.random.uniform(k4, (), jnp.float32, -bound2, bound2)
    return w1, b1, w2, b2


if __name__ == "__main__":
    key = jax.random.PRNGKey(0)
    kx, kp = jax.random.split(key)
    x = jax.random.normal(kx, (8, 3), jnp.float32)   # batch=8, in_features=3
    w1, b1, w2, b2 = init_params(kp)

    fwd = jax.jit(dvn_forward)
    out = jax.block_until_ready(fwd(x, w1, b1, w2, b2))

    # Pure-JAX reference check.
    ref = jnp.maximum(x @ w1 + b1[None, :], 0.0) @ w2[:, None] + b2
    assert out.shape == (8, 1)
    assert jnp.allclose(out, ref, atol=1e-5, rtol=1e-5)
    print("KERNEL_OK")
</pallas_src>

<mosaic_0001>
module attributes {stable_mosaic.version = 11 : i64} {
  func.func @_dvn_kernel(%arg0: i32, %arg1: memref<3x1024xf32, #tpu.memory_space<vmem>>, %arg2: memref<32x3xf32, #tpu.memory_space<vmem>>, %arg3: memref<32x1xf32, #tpu.memory_space<vmem>>, %arg4: memref<32x1xf32, #tpu.memory_space<vmem>>, %arg5: memref<1xf32, #tpu.memory_space<smem>>, %arg6: memref<1x1024xf32, #tpu.memory_space<vmem>>) attributes {dimension_semantics = [#tpu.dimension_semantics<parallel>], iteration_bounds = array<i64: 1>, scalar_prefetch = 0 : i64, scratch_operands = 0 : i64, tpu.core_type = #tpu.core_type<tc>, window_params = [{transform_indices = @transform_0, window_bounds = array<i64: 3, 1024>}, {pipeline_mode = #tpu.pipeline_mode<synchronous>, transform_indices = @transform_1, window_bounds = array<i64: 32, 3>}, {pipeline_mode = #tpu.pipeline_mode<synchronous>, transform_indices = @transform_2, window_bounds = array<i64: 32, 1>}, {pipeline_mode = #tpu.pipeline_mode<synchronous>, transform_indices = @transform_3, window_bounds = array<i64: 32, 1>}, {transform_indices = @transform_4, window_bounds = array<i64: 1>}, {transform_indices = @transform_5, window_bounds = array<i64: 1, 1024>}]} {
    %c0 = arith.constant 0 : index
    %c0_0 = arith.constant 0 : index
    %0 = vector.load %arg1[%c0, %c0_0] : memref<3x1024xf32, #tpu.memory_space<vmem>>, vector<3x1024xf32>
    %c0_1 = arith.constant 0 : index
    %c0_2 = arith.constant 0 : index
    %1 = vector.load %arg2[%c0_1, %c0_2] : memref<32x3xf32, #tpu.memory_space<vmem>>, vector<32x3xf32>
    %c0_3 = arith.constant 0 : index
    %c0_4 = arith.constant 0 : index
    %2 = vector.load %arg3[%c0_3, %c0_4] : memref<32x1xf32, #tpu.memory_space<vmem>>, vector<32x1xf32>
    %c0_5 = arith.constant 0 : index
    %c0_6 = arith.constant 0 : index
    %3 = vector.load %arg4[%c0_5, %c0_6] : memref<32x1xf32, #tpu.memory_space<vmem>>, vector<32x1xf32>
    %4 = vector.extract_strided_slice %1 {offsets = [0, 0], sizes = [32, 1], strides = [1, 1]} : vector<32x3xf32> to vector<32x1xf32>
    %5 = vector.extract_strided_slice %0 {offsets = [0, 0], sizes = [1, 1024], strides = [1, 1]} : vector<3x1024xf32> to vector<1x1024xf32>
    %6 = vector.broadcast %4 : vector<32x1xf32> to vector<32x1024xf32>
    %7 = vector.broadcast %5 : vector<1x1024xf32> to vector<32x1024xf32>
    %8 = arith.mulf %6, %7 : vector<32x1024xf32>
    %9 = vector.broadcast %2 : vector<32x1xf32> to vector<32x1024xf32>
    %10 = arith.addf %9, %8 : vector<32x1024xf32>
    %11 = vector.extract_strided_slice %1 {offsets = [0, 1], sizes = [32, 1], strides = [1, 1]} : vector<32x3xf32> to vector<32x1xf32>
    %12 = vector.extract_strided_slice %0 {offsets = [1, 0], sizes = [1, 1024], strides = [1, 1]} : vector<3x1024xf32> to vector<1x1024xf32>
    %13 = vector.broadcast %11 : vector<32x1xf32> to vector<32x1024xf32>
    %14 = vector.broadcast %12 : vector<1x1024xf32> to vector<32x1024xf32>
    %15 = arith.mulf %13, %14 : vector<32x1024xf32>
    %16 = arith.addf %10, %15 : vector<32x1024xf32>
    %17 = vector.extract_strided_slice %1 {offsets = [0, 2], sizes = [32, 1], strides = [1, 1]} : vector<32x3xf32> to vector<32x1xf32>
    %18 = vector.extract_strided_slice %0 {offsets = [2, 0], sizes = [1, 1024], strides = [1, 1]} : vector<3x1024xf32> to vector<1x1024xf32>
    %19 = vector.broadcast %17 : vector<32x1xf32> to vector<32x1024xf32>
    %20 = vector.broadcast %18 : vector<1x1024xf32> to vector<32x1024xf32>
    %21 = arith.mulf %19, %20 : vector<32x1024xf32>
    %22 = arith.addf %16, %21 : vector<32x1024xf32>
    %cst = arith.constant 0.000000e+00 : f32
    %23 = vector.broadcast %cst : f32 to vector<32x1024xf32>
    %24 = arith.maximumf %22, %23 : vector<32x1024xf32>
    %25 = vector.broadcast %3 : vector<32x1xf32> to vector<32x1024xf32>
    %26 = arith.mulf %24, %25 : vector<32x1024xf32>
    %cst_7 = arith.constant dense<0.000000e+00> : vector<1024xf32>
    %27 = vector.multi_reduction <add>, %26, %cst_7 [0] : vector<32x1024xf32> to vector<1024xf32>
    %28 = vector.shape_cast %27 : vector<1024xf32> to vector<1x1024xf32>
    %c0_8 = arith.constant 0 : index
    %29 = memref.load %arg5[%c0_8] : memref<1xf32, #tpu.memory_space<smem>>
    %30 = vector.broadcast %29 : f32 to vector<1x1024xf32>
    %31 = arith.addf %28, %30 : vector<1x1024xf32>
    %c0_9 = arith.constant 0 : index
    %c0_10 = arith.constant 0 : index
    %32 = vector.load %arg6[%c0_9, %c0_10] : memref<1x1024xf32, #tpu.memory_space<vmem>>, vector<1x1024xf32>
    tpu.vector_store %arg6[%c0_9, %c0_10], %31 {strides = array<i32>} : memref<1x1024xf32, #tpu.memory_space<vmem>>, vector<1x1024xf32>,
    return
  }
  func.func @transform_0(%arg0: i32) -> (i32, i32) {
    %c0_i32 = arith.constant 0 : i32
    %c0_i32_0 = arith.constant 0 : i32
    return %c0_i32, %arg0 : i32, i32
  }
  func.func @transform_1(%arg0: i32) -> (i32, i32) {
    %c0_i32 = arith.constant 0 : i32
    %c0_i32_0 = arith.constant 0 : i32
    %c0_i32_1 = arith.constant 0 : i32
    return %c0_i32, %c0_i32_0 : i32, i32
  }
  func.func @transform_2(%arg0: i32) -> (i32, i32) {
    %c0_i32 = arith.constant 0 : i32
    %c0_i32_0 = arith.constant 0 : i32
    %c0_i32_1 = arith.constant 0 : i32
    return %c0_i32, %c0_i32_0 : i32, i32
  }
  func.func @transform_3(%arg0: i32) -> (i32, i32) {
    %c0_i32 = arith.constant 0 : i32
    %c0_i32_0 = arith.constant 0 : i32
    %c0_i32_1 = arith.constant 0 : i32
    return %c0_i32, %c0_i32_0 : i32, i32
  }
  func.func @transform_4(%arg0: i32) -> i32 {
    %c0_i32 = arith.constant 0 : i32
    %c0_i32_0 = arith.constant 0 : i32
    return %c0_i32 : i32
  }
  func.func @transform_5(%arg0: i32) -> (i32, i32) {
    %c0_i32 = arith.constant 0 : i32
    %c0_i32_0 = arith.constant 0 : i32
    return %c0_i32, %arg0 : i32, i32
  }
}

</mosaic_0001>

<bundles_post_ra>
// kernel: dvn_forward.1
= control target key start
LH: loop header
LB: loop body
LE: loop exit
PB: predicated region body
PF: predicated region fallthrough
CT: control target
= control target key end

     0   :  { %v766_v0 = vmov 0   ;;  %v767_v6 = vmov 1   ;;  %v768_v9 = vmov 2   ;;  %v61_v15 = vlaneseq  ;;  %s1241_s1 = inlined_call_operand.vmem [shape: f32[32,3], index: 1, kind: input, shape index: {}]   ;;  %s1242_s2 = inlined_call_operand.vmem [shape: f32[32,1], index: 2, kind: input, shape index: {}]   ;;  %s1243_s3 = inlined_call_operand.vmem [shape: f32[32,1], index: 3, kind: input, shape index: {}]   ;;  %s1244_s0 = inlined_call_operand.vmem [shape: f32[3,1024], index: 0, kind: input, shape index: {}]   ;;  %s1245_s4 = inlined_call_operand.<no memory space> [shape: f32[1], index: 4, kind: input, shape index: {}]   ;;  %s1246_s5 = inlined_call_operand.vmem [shape: f32[1,1024], index: 5, kind: output, shape index: {}]  }
   0x1   :  { %755 = vset.pattern.permute.xlu1 %v766_v0  ;;  %754 = vset.pattern.permute.xlu0 %v766_v0  ;;  %v27_v1 = vld [vmem:[%s1241_s1 + $0x10] sm:$0xff]  ;;  %v25_v2 = vld [vmem:[%s1241_s1] sm:$0xff]  ;;  %v26_v4 = vld [vmem:[%s1241_s1 + $0x8] sm:$0xff]  ;;  %v769_v46 = vmov 1966171168  }
   0x2   :  { %49 = vperm.xlu1 %755, %v27_v1   ;;  %39 = vperm.xlu0 %754, %v25_v2   ;;  %v29_v3 = vld [vmem:[%s1242_s2] sm:$0xff]  ;;  %v30_v5 = vld [vmem:[%s1242_s2 + $0x8] sm:$0xff]  ;;  %v28_v7 = vld [vmem:[%s1241_s1 + $0x18] sm:$0xff]  ;;  %v836_v16 = vshrl.u32 %v61_v15, 7  ;;  %v700_v47 = vunpack.c.l.s4 %v769_v46 }
   0x3   :  { %v31_v8 = vld [vmem:[%s1242_s2 + $0x10] sm:$0xff]  ;;  %v32_v10 = vld [vmem:[%s1242_s2 + $0x18] sm:$0xff]  ;;  %v33_v11 = vld [vmem:[%s1243_s3] sm:$0xff] }
   0x4   :  { %v36_v12 = vld [vmem:[%s1243_s3 + $0x18] sm:$0xff]  ;;  %v34_v13 = vld [vmem:[%s1243_s3 + $0x8] sm:$0xff]  ;;  %v35_v14 = vld [vmem:[%s1243_s3 + $0x10] sm:$0xff]  ;;  %v63_v17 = vsub.s32 0, %v836_v16  ;;  %v67_v18 = vsub.s32 4, %v836_v16  ;;  %v235_v24 = vsub.s32 1, %v836_v16  ;;  %v701_v63 = vunpack.c.0.s8 %v700_v47 }
   0x5   :  { %v21_v19 = vld [vmem:[%s1244_s0] sm:$0x77]  ;;  %v22_v20 = vld [vmem:[%s1244_s0 + $0x8] sm:$0x77]  ;;  %v23_v21 = vld [vmem:[%s1244_s0 + $0x10] sm:$0x77] }
   0x6   :  { %167 = vperm.xlu1 %755, %v29_v3   ;;  %44 = vperm.xlu0 %754, %v26_v4   ;;  %v24_v22 = vld [vmem:[%s1244_s0 + $0x18] sm:$0x77]  ;;  %v64_v23 = vrot.slane %v21_v19, %v63_v17  ;;  %v68_v25 = vrot.slane %v21_v19, %v67_v18  ;;  %v72_v26 = vrot.slane %v22_v20, %v63_v17  ;;  %v239_v32 = vsub.s32 5, %v836_v16 }
   0x7   :  { %v76_v27 = vrot.slane %v22_v20, %v67_v18  ;;  %v80_v28 = vrot.slane %v23_v21, %v63_v17  ;;  %v84_v29 = vrot.slane %v23_v21, %v67_v18  ;;  %v88_v30 = vrot.slane %v24_v22, %v63_v17 }
   0x8   :  { %v92_v31 = vrot.slane %v24_v22, %v67_v18  ;;  %v387_v33 = vsub.s32 2, %v836_v16  ;;  %v855_v34 = vrot.slane %v64_v23, %v63_v17  ;;  %v857_v35 = vrot.slane %v68_v25, %v63_v17 }
   0x9   :  { %v859_v36 = vrot.slane %v72_v26, %v63_v17  ;;  %v236_v37 = vrot.slane %v21_v19, %v235_v24  ;;  %v391_v38 = vsub.s32 6, %v836_v16  ;;  %v862_v39 = vrot.slane %v76_v27, %v63_v17 }
   0xa   :  { %756 = vset.pattern.permute.xlu1 %v767_v6  ;;  %172 = vperm.xlu0 %754, %v30_v5   ;;  %v864_v40 = vrot.slane %v80_v28, %v63_v17  ;;  %v866_v41 = vrot.slane %v84_v29, %v63_v17  ;;  %v868_v42 = vrot.slane %v88_v30, %v63_v17 }
   0xb   :  { %218 = vperm.xlu1 %756, %v25_v2   ;;  %v870_v43 = vrot.slane %v92_v31, %v63_v17  ;;  %v240_v44 = vrot.slane %v21_v19, %v239_v32  ;;  %v244_v45 = vrot.slane %v22_v20, %v235_v24  ;;  %v248_v48 = vrot.slane %v22_v20, %v239_v32 }
   0xc   :  { %v252_v49 = vrot.slane %v23_v21, %v235_v24  ;;  %v256_v50 = vrot.slane %v23_v21, %v239_v32  ;;  %v260_v51 = vrot.slane %v24_v22, %v235_v24  ;;  %v264_v52 = vrot.slane %v24_v22, %v239_v32 }
   0xd   :  { %v872_v53 = vrot.slane %v236_v37, %v235_v24  ;;  %v388_v54 = vrot.slane %v21_v19, %v387_v33  ;;  %v392_v55 = vrot.slane %v21_v19, %v391_v38  ;;  %v396_v56 = vrot.slane %v22_v20, %v387_v33 }
   0xe   :  { %757 = vset.pattern.permute.xlu0 %v767_v6  ;;  %v400_v57 = vrot.slane %v22_v20, %v391_v38  ;;  %v404_v58 = vrot.slane %v23_v21, %v387_v33  ;;  %v408_v59 = vrot.slane %v23_v21, %v391_v38  ;;  %v874_v60 = vrot.slane %v240_v44, %v235_v24 }
   0xf   :  { %758 = vset.pattern.permute.xlu1 %v766_v0  ;;  %222 = vperm.xlu0 %757, %v26_v4   ;;  %v412_v61 = vrot.slane %v24_v22, %v387_v33  ;;  %v416_v62 = vrot.slane %v24_v22, %v391_v38  ;;  %v882_v3 = vrot.slane %v256_v50, %v235_v24  ;;  %v907_v17 = vstv %s1245_s4 }
  0x10   :  { %54 = vperm.xlu1 %758, %v28_v7   ;;  %v886_v5 = vrot.slane %v264_v52, %v235_v24  ;;  %1259 = vst [vmem:[#allocation8_spill] sm:$0xff] %v907_v17  ;;  %v910_v18 = vsub.s32 %v701_v63, %v836_v16 }
  0x11   :  { %v902_v15 = vrot.slane %v416_v62, %v387_v33 }
  0x12   :  { %1260 = vst [vmem:[#allocation9_spill] sm:$0xff] %v910_v18 }
  0x13   :  { %226 = vperm.xlu0 %757, %v27_v1   ;;  %1258 = vst [vmem:[#allocation7_spill] sm:$0xff] %v902_v15 }
  0x14   :  { %177 = vperm.xlu1 %758, %v31_v8   ;;  %v892_v8 = vrot.slane %v396_v56, %v387_v33 }
  0x17   :  { %760 = vset.pattern.permute.xlu0 %v768_v9 }
  0x18   :  { %759 = vset.pattern.permute.xlu1 %v768_v9  ;;  %374 = vperm.xlu0 %760, %v26_v4   ;;  %v884_v4 = vrot.slane %v260_v51, %v235_v24 }
  0x19   :  { %370 = vperm.xlu1 %759, %v25_v2   ;;  %v880_v2 = vrot.slane %v252_v49, %v235_v24 }
  0x1c   :  { %378 = vperm.xlu0 %760, %v27_v1   ;;  %v878_v1 = vrot.slane %v248_v48, %v235_v24 }
  0x1d   :  { %761 = vset.pattern.permute.xlu1 %v766_v0 }
  0x1e   :  { %182 = vperm.xlu1 %761, %v32_v10   ;;  %v896_v10 = vrot.slane %v404_v58, %v387_v33 }
  0x20   :  { %764 = vset.pattern.permute.xlu0 %v766_v0  ;;  %1255 = vst [vmem:[#allocation4_spill] sm:$0xff] %v896_v10 }
  0x21   :  { %555 = vperm.xlu0 %764, %v33_v11   ;;  %v898_v11 = vrot.slane %v408_v59, %v387_v33 }
  0x22   :  { %762 = vset.pattern.permute.xlu1 %v767_v6  ;;  %v888_v6 = vrot.slane %v388_v54, %v387_v33 }
  0x23   :  { %230 = vperm.xlu1 %762, %v28_v7   ;;  %1256 = vst [vmem:[#allocation5_spill] sm:$0xff] %v898_v11 }
  0x25   :  { %570 = vperm.xlu0 %764, %v36_v12  }
  0x27   :  { %763 = vset.pattern.permute.xlu1 %v768_v9  ;;  %v894_v9 = vrot.slane %v400_v57, %v387_v33 }
  0x28   :  { %382 = vperm.xlu1 %763, %v28_v7   ;;  %v890_v7 = vrot.slane %v392_v55, %v387_v33 }
  0x29   :  { %1254 = vst [vmem:[#allocation3_spill] sm:$0xff] %v894_v9 }
  0x2c   :  { %765 = vset.pattern.permute.xlu1 %v766_v0  ;;  %v876_v0 = vrot.slane %v244_v45, %v235_v24 }
  0x2d   :  { %560 = vperm.xlu1 %765, %v34_v13  }
  0x31   :  { %565 = vperm.xlu1 %765, %v35_v14   ;;  %v900_v14 = vrot.slane %v412_v61, %v387_v33 }
  0x33   :  { %1257 = vst [vmem:[#allocation6_spill] sm:$0xff] %v900_v14 }
  0x7d   :  { %v50_v12 = vpop.permute.xlu1 %49  ;;  %v40_v13 = vpop.permute.xlu0 %39 }
  0x7e   :  { %v913_v19 = vmul.f32 %v855_v34, %v50_v12  ;;  %v916_v20 = vmul.f32 %v857_v35, %v50_v12  ;;  %v919_v21 = vmul.f32 %v859_v36, %v50_v12  ;;  %v922_v22 = vmul.f32 %v862_v39, %v50_v12 }
  0x7f   :  { %v925_v23 = vmul.f32 %v864_v40, %v50_v12  ;;  %v928_v24 = vmul.f32 %v866_v41, %v50_v12  ;;  %v931_v16 = vmul.f32 %v868_v42, %v50_v12  ;;  %v934_v25 = vmul.f32 %v870_v43, %v50_v12 }
  0x80   :  { %v133_v26 = vmul.f32 %v855_v34, %v40_v13  ;;  %v134_v27 = vmul.f32 %v857_v35, %v40_v13  ;;  %v135_v28 = vmul.f32 %v859_v36, %v40_v13  ;;  %v136_v29 = vmul.f32 %v862_v39, %v40_v13 }
  0x81   :  { %v137_v30 = vmul.f32 %v864_v40, %v40_v13  ;;  %v138_v31 = vmul.f32 %v866_v41, %v40_v13  ;;  %v139_v32 = vmul.f32 %v868_v42, %v40_v13  ;;  %v140_v33 = vmul.f32 %v870_v43, %v40_v13  ;;  %v168_v37 = vpop.permute.xlu1 %167  ;;  %v45_v38 = vpop.permute.xlu0 %44 }
  0x82   :  { %v185_v44 = vadd.f32 %v168_v37, %v133_v26  ;;  %v186_v45 = vadd.f32 %v168_v37, %v134_v27  ;;  %v187_v46 = vadd.f32 %v168_v37, %v135_v28  ;;  %v188_v47 = vadd.f32 %v168_v37, %v136_v29 }
  0x83   :  { %v189_v48 = vadd.f32 %v168_v37, %v137_v30  ;;  %v190_v49 = vadd.f32 %v168_v37, %v138_v31  ;;  %v191_v50 = vadd.f32 %v168_v37, %v139_v32  ;;  %v192_v51 = vadd.f32 %v168_v37, %v140_v33 }
  0x84   :  { %v141_v52 = vmul.f32 %v855_v34, %v45_v38  ;;  %v142_v54 = vmul.f32 %v857_v35, %v45_v38  ;;  %v143_v55 = vmul.f32 %v859_v36, %v45_v38  ;;  %v144_v56 = vmul.f32 %v862_v39, %v45_v38 }
  0x85   :  { %v145_v57 = vmul.f32 %v864_v40, %v45_v38  ;;  %v146_v58 = vmul.f32 %v866_v41, %v45_v38  ;;  %v147_v59 = vmul.f32 %v868_v42, %v45_v38  ;;  %v148_v61 = vmul.f32 %v870_v43, %v45_v38  ;;  %v173_v62 = vpop.permute.xlu0 %172 }
  0x86   :  { %v219_v63 = vpop.permute.xlu1 %218  ;;  %v193_v12 = vadd.f32 %v173_v62, %v141_v52  ;;  %v194_v13 = vadd.f32 %v173_v62, %v142_v54  ;;  %v195_v26 = vadd.f32 %v173_v62, %v143_v55  ;;  %v196_v27 = vadd.f32 %v173_v62, %v144_v56 }
  0x87   :  { %v305_v28 = vmul.f32 %v872_v53, %v219_v63  ;;  %v306_v29 = vmul.f32 %v874_v60, %v219_v63  ;;  %v307_v30 = vmul.f32 %v876_v0, %v219_v63  ;;  %v308_v31 = vmul.f32 %v878_v1, %v219_v63 }
  0x88   :  { %v309_v32 = vmul.f32 %v880_v2, %v219_v63  ;;  %v310_v33 = vmul.f32 %v882_v3, %v219_v63  ;;  %v311_v37 = vmul.f32 %v884_v4, %v219_v63  ;;  %v312_v38 = vmul.f32 %v886_v5, %v219_v63 }
  0x89   :  { %v960_v52 = vadd.f32 %v305_v28, %v185_v44  ;;  %v962_v54 = vadd.f32 %v306_v29, %v186_v45  ;;  %v964_v55 = vadd.f32 %v307_v30, %v187_v46  ;;  %v966_v56 = vadd.f32 %v308_v31, %v188_v47 }
  0x8a   :  { %v968_v18 = vadd.f32 %v309_v32, %v189_v48  ;;  %v970_v17 = vadd.f32 %v310_v33, %v190_v49  ;;  %v972_v15 = vadd.f32 %v311_v37, %v191_v50  ;;  %v974_v14 = vadd.f32 %v312_v38, %v192_v51  ;;  %v223_v11 = vpop.permute.xlu0 %222 }
  0x8b   :  { %v197_v10 = vadd.f32 %v173_v62, %v145_v57  ;;  %v198_v9 = vadd.f32 %v173_v62, %v146_v58  ;;  %v199_v63 = vadd.f32 %v173_v62, %v147_v59  ;;  %v200_v44 = vadd.f32 %v173_v62, %v148_v61  ;;  %v55_v28 = vpop.permute.xlu1 %54 }
  0x8c   :  { %v977_v45 = vmul.f32 %v855_v34, %v55_v28  ;;  %v980_v46 = vmul.f32 %v857_v35, %v55_v28  ;;  %v983_v47 = vmul.f32 %v859_v36, %v55_v28  ;;  %v986_v48 = vmul.f32 %v862_v39, %v55_v28 }
  0x8d   :  { %v989_v49 = vmul.f32 %v864_v40, %v55_v28  ;;  %v992_v50 = vmul.f32 %v866_v41, %v55_v28  ;;  %v995_v51 = vmul.f32 %v868_v42, %v55_v28  ;;  %v998_v34 = vmul.f32 %v870_v43, %v55_v28 }
  0x8e   :  { %v313_v35 = vmul.f32 %v872_v53, %v223_v11  ;;  %v314_v36 = vmul.f32 %v874_v60, %v223_v11  ;;  %v315_v57 = vmul.f32 %v876_v0, %v223_v11  ;;  %v316_v39 = vmul.f32 %v878_v1, %v223_v11  ;;  %v227_v58 = vpop.permute.xlu0 %226 }
  0x8f   :  { %1261 = vst [vmem:[#allocation10_spill] sm:$0xff] %v998_v34  ;;  %v317_v40 = vmul.f32 %v880_v2, %v223_v11  ;;  %v318_v41 = vmul.f32 %v882_v3, %v223_v11  ;;  %v319_v59 = vmul.f32 %v884_v4, %v223_v11  ;;  %v320_v42 = vmul.f32 %v886_v5, %v223_v11  ;;  %v178_v61 = vpop.permute.xlu1 %177 }
  0x90   :  { %v345_v43 = vadd.f32 %v313_v35, %v193_v12  ;;  %v346_v62 = vadd.f32 %v314_v36, %v194_v13  ;;  %v347_v29 = vadd.f32 %v315_v57, %v195_v26  ;;  %v348_v30 = vadd.f32 %v316_v39, %v196_v27  ;;  %v1273_v36 = vld [vmem:[#allocation3_spill] sm:$0xff]  ;;  %v1274_v39 = vld [vmem:[#allocation4_spill] sm:$0xff] }
  0x91   :  { %v349_v31 = vadd.f32 %v317_v40, %v197_v10  ;;  %v350_v32 = vadd.f32 %v318_v41, %v198_v9  ;;  %v351_v33 = vadd.f32 %v319_v59, %v199_v63  ;;  %v352_v37 = vadd.f32 %v320_v42, %v200_v44  ;;  %v1275_v41 = vld [vmem:[#allocation5_spill] sm:$0xff]  ;;  %v1276_v42 = vld [vmem:[#allocation6_spill] sm:$0xff] }
  0x92   :  { %v1009_v38 = vadd.f32 %v178_v61, %v913_v19  ;;  %v1012_v28 = vadd.f32 %v178_v61, %v916_v20  ;;  %v1015_v34 = vadd.f32 %v178_v61, %v919_v21  ;;  %v1018_v11 = vadd.f32 %v178_v61, %v922_v22 }
  0x93   :  { %v1021_v12 = vadd.f32 %v178_v61, %v925_v23  ;;  %v1024_v10 = vadd.f32 %v178_v61, %v928_v24  ;;  %v1027_v9 = vadd.f32 %v178_v61, %v931_v16  ;;  %v1030_v19 = vadd.f32 %v178_v61, %v934_v25  ;;  %v375_v20 = vpop.permute.xlu0 %374 }
  0x94   :  { %1262 = vst [vmem:[#allocation11_spill] sm:$0xff] %v1018_v11  ;;  %v1033_v13 = vmul.f32 %v872_v53, %v227_v58  ;;  %v1036_v21 = vmul.f32 %v874_v60, %v227_v58  ;;  %v1039_v22 = vmul.f32 %v876_v0, %v227_v58  ;;  %v1042_v23 = vmul.f32 %v878_v1, %v227_v58  ;;  %v371_v24 = vpop.permute.xlu1 %370 }
  0x95   :  { %1263 = vst [vmem:[#allocation12_spill] sm:$0xff] %v1021_v12  ;;  %1264 = vst [vmem:[#allocation13_spill] sm:$0xff] %v1024_v10  ;;  %v1045_v16 = vmul.f32 %v880_v2, %v227_v58  ;;  %v1048_v25 = vmul.f32 %v882_v3, %v227_v58  ;;  %v1051_v26 = vmul.f32 %v884_v4, %v227_v58 }
  0x96   :  { %1265 = vst [vmem:[#allocation14_spill] sm:$0xff] %v1027_v9  ;;  %1266 = vst [vmem:[#allocation15_spill] sm:$0xff] %v1030_v19  ;;  %v1054_v27 = vmul.f32 %v886_v5, %v227_v58  ;;  %v465_v63 = vmul.f32 %v888_v6, %v375_v20  ;;  %v466_v44 = vmul.f32 %v890_v7, %v375_v20  ;;  %v1277_v19 = vld [vmem:[#allocation7_spill] sm:$0xff] }
  0x97   :  { %1267 = vst [vmem:[#allocation16_spill] sm:$0xff] %v1039_v22  ;;  %1268 = vst [vmem:[#allocation17_spill] sm:$0xff] %v1042_v23  ;;  %v467_v35 = vmul.f32 %v892_v8, %v375_v20  ;;  %v468_v57 = vmul.f32 %v1273_v36, %v375_v20  ;;  %v469_v40 = vmul.f32 %v1274_v39, %v375_v20 }
  0x98   :  { %1269 = vst [vmem:[#allocation18_spill] sm:$0xff] %v1045_v16  ;;  %1270 = vst [vmem:[#allocation19_spill] sm:$0xff] %v1048_v25  ;;  %v470_v59 = vmul.f32 %v1275_v41, %v375_v20  ;;  %v471_v61 = vmul.f32 %v1276_v42, %v375_v20  ;;  %v472_v9 = vmul.f32 %v1277_v19, %v375_v20  ;;  %v379_v20 = vpop.permute.xlu0 %378 }
  0x99   :  { %1271 = vst [vmem:[#allocation20_spill] sm:$0xff] %v1051_v26  ;;  %1272 = vst [vmem:[#allocation21_spill] sm:$0xff] %v1054_v27  ;;  %v1064_v26 = vadd.f32 %v465_v63, %v345_v43  ;;  %v1066_v58 = vadd.f32 %v466_v44, %v346_v62  ;;  %v1068_v27 = vadd.f32 %v467_v35, %v347_v29  ;;  %v183_v11 = vpop.permute.xlu1 %182 }
  0x9a   :  { %v1070_v25 = vadd.f32 %v468_v57, %v348_v30  ;;  %v1072_v10 = vadd.f32 %v469_v40, %v349_v31  ;;  %v1074_v16 = vadd.f32 %v470_v59, %v350_v32  ;;  %v1076_v12 = vadd.f32 %v471_v61, %v351_v33 }
  0x9b   :  { %v1078_v23 = vadd.f32 %v472_v9, %v352_v37  ;;  %v457_v22 = vmul.f32 %v888_v6, %v371_v24  ;;  %v458_v43 = vmul.f32 %v890_v7, %v371_v24  ;;  %v459_v62 = vmul.f32 %v892_v8, %v371_v24 }
  0x9c   :  { %v460_v29 = vmul.f32 %v1273_v36, %v371_v24  ;;  %v461_v30 = vmul.f32 %v1274_v39, %v371_v24  ;;  %v462_v31 = vmul.f32 %v1275_v41, %v371_v24  ;;  %v463_v32 = vmul.f32 %v1276_v42, %v371_v24 }
  0x9d   :  { %v464_v33 = vmul.f32 %v1277_v19, %v371_v24  ;;  %v489_v37 = vadd.f32 %v457_v22, %v960_v52  ;;  %v490_v9 = vadd.f32 %v458_v43, %v962_v54  ;;  %v491_v63 = vadd.f32 %v459_v62, %v964_v55 }
  0x9e   :  { %v492_v44 = vadd.f32 %v460_v29, %v966_v56  ;;  %v493_v35 = vadd.f32 %v461_v30, %v968_v18  ;;  %v494_v57 = vadd.f32 %v462_v31, %v970_v17  ;;  %v495_v40 = vadd.f32 %v463_v32, %v972_v15  ;;  %v231_v55 = vpop.permute.xlu1 %230  ;;  %v1285_v32 = vld [vmem:[#allocation10_spill] sm:$0xff] }
  0x9f   :  { %v496_v59 = vadd.f32 %v464_v33, %v974_v14  ;;  %v1097_v61 = vmul.f32 %v888_v6, %v379_v20  ;;  %v1100_v24 = vmul.f32 %v890_v7, %v379_v20  ;;  %v1103_v52 = vmul.f32 %v892_v8, %v379_v20 }
  0xa0   :  { %v1106_v54 = vmul.f32 %v1273_v36, %v379_v20  ;;  %v1109_v18 = vmul.f32 %v1274_v39, %v379_v20  ;;  %v1112_v15 = vmul.f32 %v1275_v41, %v379_v20  ;;  %v1115_v14 = vmul.f32 %v1276_v42, %v379_v20 }
  0xa1   :  { %1278 = vst [vmem:[#allocation3_spill] sm:$0xff] %v1100_v24  ;;  %1279 = vst [vmem:[#allocation4_spill] sm:$0xff] %v1103_v52  ;;  %v1118_v17 = vmul.f32 %v1277_v19, %v379_v20  ;;  %v209_v56 = vadd.f32 %v183_v11, %v977_v45  ;;  %v210_v22 = vadd.f32 %v183_v11, %v980_v46  ;;  %v522_v20 = vmax.f32 %v490_v9, 0.0 }
  0xa2   :  { %1280 = vst [vmem:[#allocation5_spill] sm:$0xff] %v1106_v54  ;;  %1281 = vst [vmem:[#allocation6_spill] sm:$0xff] %v1109_v18  ;;  %v211_v43 = vadd.f32 %v183_v11, %v983_v47  ;;  %v212_v62 = vadd.f32 %v183_v11, %v986_v48  ;;  %v213_v29 = vadd.f32 %v183_v11, %v989_v49  ;;  %v524_v18 = vmax.f32 %v492_v44, 0.0 }
  0xa3   :  { %1282 = vst [vmem:[#allocation7_spill] sm:$0xff] %v1112_v15  ;;  %1283 = vst [vmem:[#allocation22_spill] sm:$0xff] %v1115_v14  ;;  %v214_v30 = vadd.f32 %v183_v11, %v992_v50  ;;  %v215_v31 = vadd.f32 %v183_v11, %v995_v51  ;;  %v216_v33 = vadd.f32 %v183_v11, %v1285_v32  ;;  %v556_v14 = vpop.permute.xlu0 %555  ;;  %v521_v15 = vmax.f32 %v489_v37, 0.0  ;;  %v383_v47 = vpop.permute.xlu1 %382 }
  0xa4   :  { %1284 = vst [vmem:[#allocation23_spill] sm:$0xff] %v1118_v17  ;;  %v523_v17 = vmax.f32 %v491_v63, 0.0  ;;  %v525_v45 = vmax.f32 %v493_v35, 0.0  ;;  %v526_v54 = vmax.f32 %v494_v57, 0.0  ;;  %v527_v46 = vmax.f32 %v495_v40, 0.0 }
  0xa5   :  { %v528_v52 = vmax.f32 %v496_v59, 0.0  ;;  %v1128_v24 = vmul.f32 %v556_v14, %v521_v15  ;;  %v1130_v48 = vmul.f32 %v556_v14, %v522_v20  ;;  %v1134_v50 = vmul.f32 %v556_v14, %v524_v18 }
  0xa6   :  { %v1132_v49 = vmul.f32 %v556_v14, %v523_v17  ;;  %v1136_v51 = vmul.f32 %v556_v14, %v525_v45  ;;  %v1138_v11 = vmul.f32 %v556_v14, %v526_v54  ;;  %v1140_v37 = vmul.f32 %v556_v14, %v527_v46 }
  0xa7   :  { %v1142_v9 = vmul.f32 %v556_v14, %v528_v52  ;;  %v329_v63 = vmul.f32 %v872_v53, %v231_v55  ;;  %v330_v44 = vmul.f32 %v874_v60, %v231_v55  ;;  %v331_v35 = vmul.f32 %v876_v0, %v231_v55 }
  0xa8   :  { %v332_v57 = vmul.f32 %v878_v1, %v231_v55  ;;  %v333_v40 = vmul.f32 %v880_v2, %v231_v55  ;;  %v334_v59 = vmul.f32 %v882_v3, %v231_v55  ;;  %v335_v18 = vmul.f32 %v884_v4, %v231_v55  ;;  %v561_v14 = vpop.permute.xlu1 %560 }
  0xa9   :  { %1286 = vst [vmem:[#allocation10_spill] sm:$0xff] %v1142_v9  ;;  %v336_v54 = vmul.f32 %v886_v5, %v231_v55  ;;  %v481_v15 = vmul.f32 %v888_v6, %v383_v47  ;;  %v482_v52 = vmul.f32 %v890_v7, %v383_v47  ;;  %v483_v53 = vmul.f32 %v892_v8, %v383_v47 }
  0xaa   :  { %v484_v60 = vmul.f32 %v1273_v36, %v383_v47  ;;  %v485_v0 = vmul.f32 %v1274_v39, %v383_v47  ;;  %v486_v1 = vmul.f32 %v1275_v41, %v383_v47  ;;  %v487_v2 = vmul.f32 %v1276_v42, %v383_v47 }
  0xab   :  { %v488_v3 = vmul.f32 %v1277_v19, %v383_v47  ;;  %v529_v4 = vmax.f32 %v1064_v26, 0.0  ;;  %v530_v5 = vmax.f32 %v1066_v58, 0.0  ;;  %v531_v6 = vmax.f32 %v1068_v27, 0.0 }
  0xac   :  { %v532_v7 = vmax.f32 %v1070_v25, 0.0  ;;  %v533_v8 = vmax.f32 %v1072_v10, 0.0  ;;  %v534_v36 = vmax.f32 %v1074_v16, 0.0  ;;  %v535_v39 = vmax.f32 %v1076_v12, 0.0 }
  0xad   :  { %v536_v41 = vmax.f32 %v1078_v23, 0.0  ;;  %v1168_v42 = vmul.f32 %v561_v14, %v529_v4  ;;  %v1170_v19 = vmul.f32 %v561_v14, %v530_v5  ;;  %v1172_v55 = vmul.f32 %v561_v14, %v531_v6 }
  0xae   :  { %v1174_v26 = vmul.f32 %v561_v14, %v532_v7  ;;  %v1176_v58 = vmul.f32 %v561_v14, %v533_v8  ;;  %v1178_v27 = vmul.f32 %v561_v14, %v534_v36  ;;  %v1180_v25 = vmul.f32 %v561_v14, %v535_v39  ;;  %v571_v7 = vpop.permute.xlu0 %570 }
  0xaf   :  { %v1182_v10 = vmul.f32 %v561_v14, %v536_v41  ;;  %v361_v16 = vadd.f32 %v329_v63, %v209_v56  ;;  %v362_v12 = vadd.f32 %v330_v44, %v210_v22  ;;  %v363_v17 = vadd.f32 %v331_v35, %v211_v43 }
  0xb0   :  { %1287 = vst [vmem:[#allocation24_spill] sm:$0xff] %v1180_v25  ;;  %v364_v23 = vadd.f32 %v332_v57, %v212_v62  ;;  %v365_v32 = vadd.f32 %v333_v40, %v213_v29  ;;  %v366_v20 = vadd.f32 %v334_v59, %v214_v30  ;;  %v367_v45 = vadd.f32 %v335_v18, %v215_v31 }
  0xb1   :  { %v368_v46 = vadd.f32 %v336_v54, %v216_v33  ;;  %v513_v47 = vadd.f32 %v481_v15, %v361_v16  ;;  %v514_v4 = vadd.f32 %v482_v52, %v362_v12  ;;  %v515_v5 = vadd.f32 %v483_v53, %v363_v17  ;;  %v1288_v54 = vld [vmem:[#allocation16_spill] sm:$0xff]  ;;  %v1289_v52 = vld [vmem:[#allocation11_spill] sm:$0xff]  ;;  %v1295_v16 = vld [vmem:[#allocation14_spill] sm:$0xff] }
  0xb2   :  { %v516_v6 = vadd.f32 %v484_v60, %v364_v23  ;;  %v517_v8 = vadd.f32 %v485_v0, %v365_v32  ;;  %v518_v36 = vadd.f32 %v486_v1, %v366_v20  ;;  %v519_v9 = vadd.f32 %v487_v2, %v367_v45  ;;  %v1291_v60 = vld [vmem:[#allocation12_spill] sm:$0xff]  ;;  %v1292_v0 = vld [vmem:[#allocation18_spill] sm:$0xff]  ;;  %v1293_v2 = vld [vmem:[#allocation13_spill] sm:$0xff] }
  0xb3   :  { %v520_v39 = vadd.f32 %v488_v3, %v368_v46  ;;  %v545_v25 = vmax.f32 %v513_v47, 0.0  ;;  %v546_v14 = vmax.f32 %v514_v4, 0.0  ;;  %v547_v41 = vmax.f32 %v515_v5, 0.0  ;;  %v1294_v3 = vld [vmem:[#allocation19_spill] sm:$0xff]  ;;  %v1296_v12 = vld [vmem:[#allocation20_spill] sm:$0xff]  ;;  %v1301_v45 = vld [vmem:[#allocation5_spill] sm:$0xff]  ;;  %v566_v47 = vpop.permute.xlu1 %565 }
  0xb4   :  { %v548_v56 = vmax.f32 %v516_v6, 0.0  ;;  %v549_v22 = vmax.f32 %v517_v8, 0.0  ;;  %v550_v43 = vmax.f32 %v518_v36, 0.0  ;;  %v551_v62 = vmax.f32 %v519_v9, 0.0  ;;  %v1290_v9 = vld [vmem:[#allocation17_spill] sm:$0xff]  ;;  %v1297_v23 = vld [vmem:[#allocation15_spill] sm:$0xff] }
  0xb5   :  { %v552_v29 = vmax.f32 %v520_v39, 0.0  ;;  %v597_v30 = vmul.f32 %v571_v7, %v545_v25  ;;  %v598_v31 = vmul.f32 %v571_v7, %v546_v14  ;;  %v599_v33 = vmul.f32 %v571_v7, %v547_v41  ;;  %v1302_v4 = vld [vmem:[#allocation6_spill] sm:$0xff]  ;;  %v1303_v6 = vld [vmem:[#allocation7_spill] sm:$0xff] }
  0xb6   :  { %v600_v63 = vmul.f32 %v571_v7, %v548_v56  ;;  %v601_v44 = vmul.f32 %v571_v7, %v549_v22  ;;  %v602_v35 = vmul.f32 %v571_v7, %v550_v43  ;;  %v603_v57 = vmul.f32 %v571_v7, %v551_v62  ;;  %v1304_v8 = vld [vmem:[#allocation22_spill] sm:$0xff]  ;;  %v1305_v39 = vld [vmem:[#allocation23_spill] sm:$0xff] }
  0xb7   :  { %v604_v40 = vmul.f32 %v571_v7, %v552_v29  ;;  %v353_v59 = vadd.f32 %v1033_v13, %v1009_v38  ;;  %v354_v18 = vadd.f32 %v1036_v21, %v1012_v28  ;;  %v355_v15 = vadd.f32 %v1288_v54, %v1015_v34  ;;  %v1298_v38 = vld [vmem:[#allocation21_spill] sm:$0xff]  ;;  %v1299_v21 = vld [vmem:[#allocation3_spill] sm:$0xff]  ;;  %v1300_v34 = vld [vmem:[#allocation4_spill] sm:$0xff] }
  0xb8   :  { %v356_v53 = vadd.f32 %v1290_v9, %v1289_v52  ;;  %v357_v1 = vadd.f32 %v1292_v0, %v1291_v60  ;;  %v358_v25 = vadd.f32 %v1294_v3, %v1293_v2  ;;  %v359_v17 = vadd.f32 %v1296_v12, %v1295_v16 }
  0xb9   :  { %v360_v13 = vadd.f32 %v1298_v38, %v1297_v23  ;;  %v505_v28 = vadd.f32 %v1097_v61, %v353_v59  ;;  %v506_v32 = vadd.f32 %v1299_v21, %v354_v18  ;;  %v507_v20 = vadd.f32 %v1300_v34, %v355_v15  ;;  %v1307_v38 = vld [vmem:[#allocation10_spill] sm:$0xff] }
  0xba   :  { %v508_v46 = vadd.f32 %v1301_v45, %v356_v53  ;;  %v509_v5 = vadd.f32 %v1302_v4, %v357_v1  ;;  %v510_v7 = vadd.f32 %v1303_v6, %v358_v25  ;;  %v511_v36 = vadd.f32 %v1304_v8, %v359_v17  ;;  %v1306_v17 = vld [vmem:[#allocation24_spill] sm:$0xff] }
  0xbb   :  { %v512_v14 = vadd.f32 %v1305_v39, %v360_v13  ;;  %v537_v41 = vmax.f32 %v505_v28, 0.0  ;;  %v538_v56 = vmax.f32 %v506_v32, 0.0  ;;  %v539_v22 = vmax.f32 %v507_v20, 0.0 }
  0xbc   :  { %v540_v43 = vmax.f32 %v508_v46, 0.0  ;;  %v541_v61 = vmax.f32 %v509_v5, 0.0  ;;  %v542_v62 = vmax.f32 %v510_v7, 0.0  ;;  %v543_v29 = vmax.f32 %v511_v36, 0.0 }
  0xbd   :  { %v544_v59 = vmax.f32 %v512_v14, 0.0  ;;  %v589_v18 = vmul.f32 %v566_v47, %v537_v41  ;;  %v590_v54 = vmul.f32 %v566_v47, %v538_v56  ;;  %v591_v15 = vmul.f32 %v566_v47, %v539_v22 }
  0xbe   :  { %v592_v52 = vmul.f32 %v566_v47, %v540_v43  ;;  %v593_v9 = vmul.f32 %v566_v47, %v541_v61  ;;  %v594_v53 = vmul.f32 %v566_v47, %v542_v62  ;;  %v595_v60 = vmul.f32 %v566_v47, %v543_v29 }
  0xbf   :  { %v596_v0 = vmul.f32 %v566_v47, %v544_v59  ;;  %v605_v1 = vadd.f32 %v1168_v42, %v1128_v24  ;;  %v614_v2 = vadd.f32 %v1170_v19, %v1130_v48  ;;  %v623_v3 = vadd.f32 %v1172_v55, %v1132_v49 }
  0xc0   :  { %v632_v25 = vadd.f32 %v1174_v26, %v1134_v50  ;;  %v641_v16 = vadd.f32 %v1176_v58, %v1136_v51  ;;  %v650_v12 = vadd.f32 %v1178_v27, %v1138_v11  ;;  %v659_v23 = vadd.f32 %v1306_v17, %v1140_v37 }
  0xc1   :  { %v668_v24 = vadd.f32 %v1182_v10, %v1307_v38  ;;  %v606_v42 = vadd.f32 %v605_v1, %v589_v18  ;;  %v615_v48 = vadd.f32 %v614_v2, %v590_v54  ;;  %v624_v19 = vadd.f32 %v623_v3, %v591_v15 }
  0xc2   :  { %v633_v13 = vadd.f32 %v632_v25, %v592_v52  ;;  %v642_v49 = vadd.f32 %v641_v16, %v593_v9  ;;  %v651_v55 = vadd.f32 %v650_v12, %v594_v53  ;;  %v660_v28 = vadd.f32 %v659_v23, %v595_v60 }
  0xc3   :  { %v669_v50 = vadd.f32 %v668_v24, %v596_v0  ;;  %v607_v26 = vadd.f32 %v606_v42, %v597_v30  ;;  %v616_v21 = vadd.f32 %v615_v48, %v598_v31  ;;  %v625_v51 = vadd.f32 %v624_v19, %v599_v33  ;;  %v1308_v42 = vld [vmem:[#allocation8_spill] sm:$0xff] }
  0xc4   :  { %v634_v58 = vadd.f32 %v633_v13, %v600_v63  ;;  %v643_v32 = vadd.f32 %v642_v49, %v601_v44  ;;  %v652_v11 = vadd.f32 %v651_v55, %v602_v35  ;;  %v661_v27 = vadd.f32 %v660_v28, %v603_v57 }
  0xc5   :  { %v670_v34 = vadd.f32 %v669_v50, %v604_v40  ;;  %v608_v37 = vrot.slane %v607_v26, 4  ;;  %v617_v20 = vrot.slane %v616_v21, 4  ;;  %v626_v45 = vrot.slane %v625_v51, 4 }
  0xc6   :  { %v635_v10 = vrot.slane %v634_v58, 4  ;;  %v644_v46 = vrot.slane %v643_v32, 4  ;;  %v653_v47 = vrot.slane %v652_v11, 4  ;;  %v662_v4 = vrot.slane %v661_v27, 4 }
  0xc7   :  { %v671_v5 = vrot.slane %v670_v34, 4  ;;  %v609_v6 = vadd.f32 %v608_v37, %v607_v26  ;;  %v618_v7 = vadd.f32 %v617_v20, %v616_v21  ;;  %v627_v8 = vadd.f32 %v626_v45, %v625_v51 }
  0xc8   :  { %v636_v36 = vadd.f32 %v635_v10, %v634_v58  ;;  %v645_v30 = vadd.f32 %v644_v46, %v643_v32  ;;  %v654_v31 = vadd.f32 %v653_v47, %v652_v11  ;;  %v663_v33 = vadd.f32 %v662_v4, %v661_v27  ;;  %v1309_v11 = vld [vmem:[#allocation9_spill] sm:$0xff] }
  0xc9   :  { %v672_v63 = vadd.f32 %v671_v5, %v670_v34  ;;  %v610_v44 = vrot.slane %v609_v6, 2  ;;  %v619_v35 = vrot.slane %v618_v7, 2  ;;  %v628_v57 = vrot.slane %v627_v8, 2 }
  0xca   :  { %v637_v40 = vrot.slane %v636_v36, 2  ;;  %v646_v39 = vrot.slane %v645_v30, 2  ;;  %v655_v14 = vrot.slane %v654_v31, 2  ;;  %v664_v41 = vrot.slane %v663_v33, 2 }
  0xcb   :  { %v673_v56 = vrot.slane %v672_v63, 2  ;;  %v611_v22 = vadd.f32 %v610_v44, %v609_v6  ;;  %v620_v43 = vadd.f32 %v619_v35, %v618_v7  ;;  %v629_v61 = vadd.f32 %v628_v57, %v627_v8 }
  0xcc   :  { %v638_v62 = vadd.f32 %v637_v40, %v636_v36  ;;  %v647_v29 = vadd.f32 %v646_v39, %v645_v30  ;;  %v656_v59 = vadd.f32 %v655_v14, %v654_v31  ;;  %v665_v18 = vadd.f32 %v664_v41, %v663_v33 }
  0xcd   :  { %v674_v54 = vadd.f32 %v673_v56, %v672_v63  ;;  %v612_v15 = vrot.slane %v611_v22, 1  ;;  %v621_v52 = vrot.slane %v620_v43, 1  ;;  %v630_v9 = vrot.slane %v629_v61, 1 }
  0xce   :  { %v639_v53 = vrot.slane %v638_v62, 1  ;;  %v648_v60 = vrot.slane %v647_v29, 1  ;;  %v657_v0 = vrot.slane %v656_v59, 1  ;;  %v666_v1 = vrot.slane %v665_v18, 1 }
  0xcf   :  { %v675_v2 = vrot.slane %v674_v54, 1  ;;  %v613_v3 = vadd.f32 %v612_v15, %v611_v22  ;;  %v622_v25 = vadd.f32 %v621_v52, %v620_v43  ;;  %v631_v16 = vadd.f32 %v630_v9, %v629_v61 }
  0xd0   :  { %v640_v12 = vadd.f32 %v639_v53, %v638_v62  ;;  %v649_v17 = vadd.f32 %v648_v60, %v647_v29  ;;  %v658_v23 = vadd.f32 %v657_v0, %v656_v59  ;;  %v667_v38 = vadd.f32 %v666_v1, %v665_v18 }
  0xd1   :  { %v676_v24 = vadd.f32 %v675_v2, %v674_v54  ;;  %v679_v48 = vadd.f32 %v1308_v42, %v613_v3  ;;  %v680_v19 = vadd.f32 %v1308_v42, %v622_v25  ;;  %v681_v13 = vadd.f32 %v1308_v42, %v631_v16 }
  0xd2   :  { %v682_v49 = vadd.f32 %v1308_v42, %v640_v12  ;;  %v683_v55 = vadd.f32 %v1308_v42, %v649_v17  ;;  %v684_v28 = vadd.f32 %v1308_v42, %v658_v23  ;;  %v685_v50 = vadd.f32 %v1308_v42, %v667_v38 }
  0xd3   :  { %v686_v26 = vadd.f32 %v1308_v42, %v676_v24  ;;  %v695_v21 = vcombine.low %v679_v48, %v680_v19 }
  0xd4   :  { %v696_v51 = vcombine.low %v681_v13, %v682_v49  ;;  %v697_v58 = vcombine.low %v683_v55, %v684_v28 }
  0xd5   :  { %v698_v32 = vcombine.low %v685_v50, %v686_v26  ;;  %v705_v27 = vrot.slane %v695_v21, %v1309_v11 }
  0xd6   :  { %v712_v34 = vrot.slane %v696_v51, %v1309_v11  ;;  %v719_v37 = vrot.slane %v697_v58, %v1309_v11 }
  0xd7   :  { %v726_v20 = vrot.slane %v698_v32, %v1309_v11 }
  0xd8   :  { %v727_v45 = vcombine.low %v705_v27, %v712_v34 }
  0xd9   :  { %v728_v10 = vcombine.low %v719_v37, %v726_v20 }
  0xda   :  { %v735_v46 = vrot.slane %v727_v45, %v1309_v11 }
  0xdb   :  { %v742_v47 = vrot.slane %v728_v10, %v1309_v11 }
  0xdd   :  { %v743_v4 = vcombine.low %v735_v46, %v742_v47 }
  0xdf   :  { %745 = vst [vmem:[%s1246_s5] sm:$0xff] %v743_v4 }

</bundles_post_ra>
